<compile_context>
chip_gen: v7x
topology: tpu7x:2x2x1
jax: 0.10.0
libtpu: 0.0.40
codegen_flags: <defaults>
</compile_context>

<pallas_src>
import jax
import jax.numpy as jnp
from jax.experimental import pallas as pl
from jax.experimental.pallas import tpu as pltpu


def _round_up(x, m):
    return (x + m - 1) // m * m


def _sublane_multiple(dtype):
    # f32 -> 8, bf16 -> 16, int8/fp8 -> 32 (packed sublane rows).
    return max(8, 32 // jnp.dtype(dtype).itemsize)


def _generation_budgets():
    """(tile_budget_bytes, vmem_limit_bytes), generation-aware."""
    vmem_cap = None
    try:
        info = pltpu.get_tpu_info()
        vmem_cap = getattr(info, "vmem_capacity_bytes", None)
    except Exception:
        vmem_cap = None
    if vmem_cap is None:
        vmem_cap = 64 * 1024 * 1024          # be conservative (v7x-sized)
    if vmem_cap >= 96 * 1024 * 1024:         # v5e / v6e: 128 MiB VMEM
        return 56 * 1024 * 1024, 100 * 1024 * 1024
    else:                                    # v7x: 64 MiB VMEM per TensorCore
        return 24 * 1024 * 1024, 48 * 1024 * 1024


def _decoder_kernel(z_ref, wt_ref, b_ref, out_ref):
    # z_ref:   (TB, latent_dim)          compute dtype (f32 or bf16)
    # wt_ref:  (latent_dim, obs_dim_p)   compute dtype, MXU-native layout
    # b_ref:   (1, obs_dim_p)            float32
    # out_ref: (TB, obs_dim_p)           output dtype
    logits = jnp.dot(z_ref[...], wt_ref[...], preferred_element_type=jnp.float32)
    logits = logits + b_ref[...]                       # (1, obs) broadcast over batch
    # sigmoid via a single transcendental: sigmoid(x) = 0.5*(tanh(x/2)+1)
    out_ref[...] = (0.5 * (jnp.tanh(0.5 * logits) + 1.0)).astype(out_ref.dtype)


def _choose_block_batch(B, latent_dim, obs_p, in_itemsize, out_itemsize,
                        sublane, tile_budget_bytes, min_grid_steps):
    """Balanced, sublane-aligned batch tile that fits the VMEM budget.

    Budget counts: 2x-buffered resident W/bias (worst case, in case the
    Buffered(1) request is unavailable), 2x-buffered z and out tiles, and the
    un-buffered f32 (tb, obs_p) logits intermediate.
    """
    resident = 2 * (latent_dim * obs_p * in_itemsize + obs_p * 4)
    avail = max(tile_budget_bytes - resident, 64 * 1024)
    per_row = (2 * latent_dim * in_itemsize        # z, double-buffered
               + 2 * obs_p * out_itemsize          # out, double-buffered
               + obs_p * 4)                        # f32 logits intermediate
    tb_max = int(avail // per_row)
    tb_max = (tb_max // sublane) * sublane
    tb_max = max(sublane, min(tb_max, 4096))

    # Balanced tiling: aim for >= min_grid_steps tiles (keeps both v7x
    # TensorCores busy) without padding the batch by nearly a full tile.
    n_tiles_target = max(1, min(min_grid_steps, pl.cdiv(B, sublane)))
    n_tiles = max(n_tiles_target, pl.cdiv(B, tb_max))
    tb = _round_up(pl.cdiv(B, n_tiles), sublane)
    tb = max(sublane, min(tb, tb_max))
    return tb


def _pallas_decode(z_c, wt, b2, *, tb, latent_dim, obs_p, b_pad, out_dtype,
                   vmem_limit_bytes, single_buffer_residents):
    resident_kwargs = {}
    if single_buffer_residents and hasattr(pl, "Buffered"):
        # Constant-index operands never change block -> no need to double-buffer.
        resident_kwargs = {"pipeline_mode": pl.Buffered(1)}

    grid = (b_pad // tb,)
    return pl.pallas_call(
        _decoder_kernel,
        out_shape=jax.ShapeDtypeStruct((b_pad, obs_p), out_dtype),
        grid_spec=pltpu.PrefetchScalarGridSpec(
            num_scalar_prefetch=0,
            grid=grid,
            in_specs=[
                # z: tiled along batch, latent on lanes (full extent).
                pl.BlockSpec((tb, latent_dim), lambda i: (i, 0)),
                # W^T: constant block index -> resident in VMEM, MXU-native.
                pl.BlockSpec((latent_dim, obs_p), lambda i: (0, 0),
                             **resident_kwargs),
                # bias: constant block index -> resident in VMEM.
                pl.BlockSpec((1, obs_p), lambda i: (0, 0), **resident_kwargs),
            ],
            out_specs=pl.BlockSpec((tb, obs_p), lambda i: (i, 0)),
        ),
        compiler_params=pltpu.CompilerParams(
            dimension_semantics=("parallel",),       # megacore-shard the batch axis
            vmem_limit_bytes=vmem_limit_bytes,
        ),
    )(z_c, wt, b2)


def decoder_forward(z, weight, bias, *, compute_dtype=None, out_dtype=None,
                    tile_budget_bytes=None, vmem_limit_bytes=None,
                    min_grid_steps=2):
    """Pallas implementation of: sigmoid(z @ weight.T + bias).

    z:      (B, latent_dim)
    weight: (obs_dim, latent_dim)   (PyTorch nn.Linear convention)
    bias:   (obs_dim,)
    compute_dtype: dtype for the MXU contraction (e.g. jnp.bfloat16); the
                   accumulation, bias add and sigmoid stay in float32.
    out_dtype: output dtype (defaults to z.dtype); bf16 halves the dominant
               HBM-writeback term for this mem-bound op.
    returns (B, obs_dim) in out_dtype.
    """
    B, latent_dim = z.shape
    obs_dim, latent_dim_w = weight.shape
    assert latent_dim_w == latent_dim, "weight must be (obs_dim, latent_dim)"

    if compute_dtype is None:
        compute_dtype = z.dtype
    if out_dtype is None:
        out_dtype = z.dtype

    default_tile, default_vmem = _generation_budgets()
    if tile_budget_bytes is None:
        tile_budget_bytes = default_tile
    if vmem_limit_bytes is None:
        vmem_limit_bytes = default_vmem

    # Lane-dense output: pad obs_dim to a multiple of 128 so output stores are
    # unmasked full-lane vst.  The transpose to MXU-native (latent, obs_p)
    # layout is folded into this one-time pad/cast copy of W.
    obs_p = _round_up(obs_dim, 128)
    wt = jnp.transpose(weight).astype(compute_dtype)         # (latent, obs)
    if obs_p != obs_dim:
        wt = jnp.pad(wt, ((0, 0), (0, obs_p - obs_dim)))
        bias = jnp.pad(bias, (0, obs_p - obs_dim))
    b2 = bias.astype(jnp.float32).reshape(1, obs_p)

    in_itemsize = jnp.dtype(compute_dtype).itemsize
    out_itemsize = jnp.dtype(out_dtype).itemsize
    sublane = max(_sublane_multiple(compute_dtype), _sublane_multiple(out_dtype))

    tb = _choose_block_batch(B, latent_dim, obs_p, in_itemsize, out_itemsize,
                             sublane, tile_budget_bytes, min_grid_steps)

    b_pad = _round_up(B, tb)
    z_c = z.astype(compute_dtype)
    if b_pad != B:
        z_c = jnp.pad(z_c, ((0, b_pad - B), (0, 0)))

    call_kwargs = dict(tb=tb, latent_dim=latent_dim, obs_p=obs_p, b_pad=b_pad,
                       out_dtype=out_dtype, vmem_limit_bytes=vmem_limit_bytes)
    try:
        out = _pallas_decode(z_c, wt, b2, single_buffer_residents=True,
                             **call_kwargs)
    except Exception:
        # Fallback: let Pallas double-buffer the residents (already budgeted).
        out = _pallas_decode(z_c, wt, b2, single_buffer_residents=False,
                             **call_kwargs)

    return out[:B, :obs_dim]


def reference_forward(z, weight, bias):
    return jax.nn.sigmoid(z @ weight.T + bias)


if __name__ == "__main__":
    # Small shapes consistent with the module: latent_dim -> obs_dim (input_size)
    B, LATENT_DIM, OBS_DIM = 8, 32, 128

    key = jax.random.PRNGKey(0)
    kz, kw, kb = jax.random.split(key, 3)

    z = jax.random.normal(kz, (B, LATENT_DIM), dtype=jnp.float32)
    # Deterministic parameter init (synthetic; no checkpoint loading)
    weight = jax.random.normal(kw, (OBS_DIM, LATENT_DIM), dtype=jnp.float32) * 0.05
    bias = jax.random.normal(kb, (OBS_DIM,), dtype=jnp.float32) * 0.01

    # f32 path — strict check against the reference.
    out = jax.block_until_ready(decoder_forward(z, weight, bias))
    ref = reference_forward(z, weight, bias)
    assert out.shape == (B, OBS_DIM)
    assert jnp.allclose(out, ref, atol=1e-5, rtol=1e-5), "f32 mismatch vs reference"

    # bf16-matmul path (f32 accumulate + f32 bias/sigmoid) — looser tolerance.
    out_bf16 = jax.block_until_ready(
        decoder_forward(z, weight, bias, compute_dtype=jnp.bfloat16))
    assert out_bf16.shape == (B, OBS_DIM)
    assert jnp.allclose(out_bf16, ref, atol=2e-2, rtol=2e-2), "bf16 mismatch vs reference"

    # bf16 output path (mem-bound writeback halved) — outputs in [0,1].
    out_bf16_out = jax.block_until_ready(
        decoder_forward(z, weight, bias, out_dtype=jnp.bfloat16))
    assert out_bf16_out.dtype == jnp.bfloat16
    assert jnp.allclose(out_bf16_out.astype(jnp.float32), ref, atol=1e-2, rtol=1e-2), \
        "bf16-out mismatch vs reference"

    # Ragged shapes (batch not a multiple of the sublane tile, obs_dim not a
    # multiple of 128) — exercises lane/sublane padding and a 2-step grid.
    B2, OBS2 = 10, 200
    kz2, kw2, kb2 = jax.random.split(jax.random.PRNGKey(1), 3)
    z2 = jax.random.normal(kz2, (B2, LATENT_DIM), dtype=jnp.float32)
    w2 = jax.random.normal(kw2, (OBS2, LATENT_DIM), dtype=jnp.float32) * 0.05
    b2 = jax.random.normal(kb2, (OBS2,), dtype=jnp.float32) * 0.01
    out2 = jax.block_until_ready(decoder_forward(z2, w2, b2))
    ref2 = reference_forward(z2, w2, b2)
    assert out2.shape == (B2, OBS2)
    assert jnp.allclose(out2, ref2, atol=1e-5, rtol=1e-5), "ragged mismatch vs reference"

    # Larger batch — forces a multi-step balanced grid (>= 2 tiles, minimal padding).
    B3 = 48
    z3 = jax.random.normal(jax.random.PRNGKey(2), (B3, LATENT_DIM), dtype=jnp.float32)
    out3 = jax.block_until_ready(decoder_forward(z3, weight, bias))
    ref3 = reference_forward(z3, weight, bias)
    assert out3.shape == (B3, OBS_DIM)
    assert jnp.allclose(out3, ref3, atol=1e-5, rtol=1e-5), "multi-tile mismatch vs reference"

    print("KERNEL_OK")
</pallas_src>

<mosaic_0001>
module attributes {stable_mosaic.version = 11 : i64} {
  func.func @_decoder_kernel(%arg0: i32, %arg1: memref<8x32xf32, #tpu.memory_space<vmem>>, %arg2: memref<32x128xf32, #tpu.memory_space<vmem>>, %arg3: memref<1x128xf32, #tpu.memory_space<vmem>>, %arg4: memref<8x128xf32, #tpu.memory_space<vmem>>) attributes {dimension_semantics = [#tpu.dimension_semantics<parallel>], iteration_bounds = array<i64: 1>, scalar_prefetch = 0 : i64, scratch_operands = 0 : i64, tpu.core_type = #tpu.core_type<tc>, window_params = [{transform_indices = @transform_0, window_bounds = array<i64: 8, 32>}, {pipeline_mode = #tpu.pipeline_mode<synchronous>, transform_indices = @transform_1, window_bounds = array<i64: 32, 128>}, {pipeline_mode = #tpu.pipeline_mode<synchronous>, transform_indices = @transform_2, window_bounds = array<i64: 1, 128>}, {transform_indices = @transform_3, window_bounds = array<i64: 8, 128>}]} {
    %c0 = arith.constant 0 : index
    %c0_0 = arith.constant 0 : index
    %0 = vector.load %arg1[%c0, %c0_0] : memref<8x32xf32, #tpu.memory_space<vmem>>, vector<8x32xf32>
    %c0_1 = arith.constant 0 : index
    %c0_2 = arith.constant 0 : index
    %1 = vector.load %arg2[%c0_1, %c0_2] : memref<32x128xf32, #tpu.memory_space<vmem>>, vector<32x128xf32>
    %cst = arith.constant dense<0.000000e+00> : vector<8x128xf32>
    %2 = tpu.matmul %0, %1, %cst {dimension_numbers = #tpu.dot_dimension_numbers<[1], [0], [0], [1], [0, 0, 1, 1], [], []>} : vector<8x32xf32>, vector<32x128xf32>, vector<8x128xf32> -> vector<8x128xf32>
    %c0_3 = arith.constant 0 : index
    %c0_4 = arith.constant 0 : index
    %3 = vector.load %arg3[%c0_3, %c0_4] : memref<1x128xf32, #tpu.memory_space<vmem>>, vector<1x128xf32>
    %4 = vector.broadcast %3 : vector<1x128xf32> to vector<8x128xf32>
    %5 = arith.addf %2, %4 : vector<8x128xf32>
    %cst_5 = arith.constant 5.000000e-01 : f32
    %6 = vector.broadcast %cst_5 : f32 to vector<8x128xf32>
    %7 = arith.mulf %6, %5 : vector<8x128xf32>
    %8 = math.tanh %7 : vector<8x128xf32>
    %cst_6 = arith.constant 1.000000e+00 : f32
    %9 = vector.broadcast %cst_6 : f32 to vector<8x128xf32>
    %10 = arith.addf %8, %9 : vector<8x128xf32>
    %cst_7 = arith.constant 5.000000e-01 : f32
    %11 = vector.broadcast %cst_7 : f32 to vector<8x128xf32>
    %12 = arith.mulf %11, %10 : vector<8x128xf32>
    %c0_8 = arith.constant 0 : index
    %c0_9 = arith.constant 0 : index
    %13 = vector.load %arg4[%c0_8, %c0_9] : memref<8x128xf32, #tpu.memory_space<vmem>>, vector<8x128xf32>
    tpu.vector_store %arg4[%c0_8, %c0_9], %12 {strides = array<i32>} : memref<8x128xf32, #tpu.memory_space<vmem>>, vector<8x128xf32>,
    return
  }
  func.func @transform_0(%arg0: i32) -> (i32, i32) {
    %c0_i32 = arith.constant 0 : i32
    %c0_i32_0 = arith.constant 0 : i32
    return %arg0, %c0_i32 : i32, i32
  }
  func.func @transform_1(%arg0: i32) -> (i32, i32) {
    %c0_i32 = arith.constant 0 : i32
    %c0_i32_0 = arith.constant 0 : i32
    %c0_i32_1 = arith.constant 0 : i32
    return %c0_i32, %c0_i32_0 : i32, i32
  }
  func.func @transform_2(%arg0: i32) -> (i32, i32) {
    %c0_i32 = arith.constant 0 : i32
    %c0_i32_0 = arith.constant 0 : i32
    %c0_i32_1 = arith.constant 0 : i32
    return %c0_i32, %c0_i32_0 : i32, i32
  }
  func.func @transform_3(%arg0: i32) -> (i32, i32) {
    %c0_i32 = arith.constant 0 : i32
    %c0_i32_0 = arith.constant 0 : i32
    return %arg0, %c0_i32 : i32, i32
  }
}

module attributes {stable_mosaic.version = 11 : i64} {
  func.func @_decoder_kernel(%arg0: i32, %arg1: memref<8x32xf32, #tpu.memory_space<vmem>>, %arg2: memref<32x128xf32, #tpu.memory_space<vmem>>, %arg3: memref<1x128xf32, #tpu.memory_space<vmem>>, %arg4: memref<8x128xf32, #tpu.memory_space<vmem>>) attributes {dimension_semantics = [#tpu.dimension_semantics<parallel>], iteration_bounds = array<i64: 1>, scalar_prefetch = 0 : i64, scratch_operands = 0 : i64, tpu.core_type = #tpu.core_type<tc>, window_params = [{transform_indices = @transform_0, window_bounds = array<i64: 8, 32>}, {pipeline_mode = #tpu.pipeline_mode<synchronous>, transform_indices = @transform_1, window_bounds = array<i64: 32, 128>}, {pipeline_mode = #tpu.pipeline_mode<synchronous>, transform_indices = @transform_2, window_bounds = array<i64: 1, 128>}, {transform_indices = @transform_3, window_bounds = array<i64: 8, 128>}]} {
    %c0 = arith.constant 0 : index
    %c0_0 = arith.constant 0 : index
    %0 = vector.load %arg1[%c0, %c0_0] : memref<8x32xf32, #tpu.memory_space<vmem>>, vector<8x32xf32>
    %c0_1 = arith.constant 0 : index
    %c0_2 = arith.constant 0 : index
    %1 = vector.load %arg2[%c0_1, %c0_2] : memref<32x128xf32, #tpu.memory_space<vmem>>, vector<32x128xf32>
    %cst = arith.constant dense<0.000000e+00> : vector<8x128xf32>
    %2 = tpu.matmul %0, %1, %cst {dimension_numbers = #tpu.dot_dimension_numbers<[1], [0], [0], [1], [0, 0, 1, 1], [], []>} : vector<8x32xf32>, vector<32x128xf32>, vector<8x128xf32> -> vector<8x128xf32>
    %c0_3 = arith.constant 0 : index
    %c0_4 = arith.constant 0 : index
    %3 = vector.load %arg3[%c0_3, %c0_4] : memref<1x128xf32, #tpu.memory_space<vmem>>, vector<1x128xf32>
    %4 = vector.broadcast %3 : vector<1x128xf32> to vector<8x128xf32>
    %5 = arith.addf %2, %4 : vector<8x128xf32>
    %cst_5 = arith.constant 5.000000e-01 : f32
    %6 = vector.broadcast %cst_5 : f32 to vector<8x128xf32>
    %7 = arith.mulf %6, %5 : vector<8x128xf32>
    %8 = math.tanh %7 : vector<8x128xf32>
    %cst_6 = arith.constant 1.000000e+00 : f32
    %9 = vector.broadcast %cst_6 : f32 to vector<8x128xf32>
    %10 = arith.addf %8, %9 : vector<8x128xf32>
    %cst_7 = arith.constant 5.000000e-01 : f32
    %11 = vector.broadcast %cst_7 : f32 to vector<8x128xf32>
    %12 = arith.mulf %11, %10 : vector<8x128xf32>
    %c0_8 = arith.constant 0 : index
    %c0_9 = arith.constant 0 : index
    %13 = vector.load %arg4[%c0_8, %c0_9] : memref<8x128xf32, #tpu.memory_space<vmem>>, vector<8x128xf32>
    tpu.vector_store %arg4[%c0_8, %c0_9], %12 {strides = array<i32>} : memref<8x128xf32, #tpu.memory_space<vmem>>, vector<8x128xf32>,
    return
  }
  func.func @transform_0(%arg0: i32) -> (i32, i32) {
    %c0_i32 = arith.constant 0 : i32
    %c0_i32_0 = arith.constant 0 : i32
    return %arg0, %c0_i32 : i32, i32
  }
  func.func @transform_1(%arg0: i32) -> (i32, i32) {
    %c0_i32 = arith.constant 0 : i32
    %c0_i32_0 = arith.constant 0 : i32
    %c0_i32_1 = arith.constant 0 : i32
    return %c0_i32, %c0_i32_0 : i32, i32
  }
  func.func @transform_2(%arg0: i32) -> (i32, i32) {
    %c0_i32 = arith.constant 0 : i32
    %c0_i32_0 = arith.constant 0 : i32
    %c0_i32_1 = arith.constant 0 : i32
    return %c0_i32, %c0_i32_0 : i32, i32
  }
  func.func @transform_3(%arg0: i32) -> (i32, i32) {
    %c0_i32 = arith.constant 0 : i32
    %c0_i32_0 = arith.constant 0 : i32
    return %arg0, %c0_i32 : i32, i32
  }
}

</mosaic_0001>

<bundles_post_ra>
// kernel: tpu_custom_call.1
= control target key start
LH: loop header
LB: loop body
LE: loop exit
PB: predicated region body
PF: predicated region fallthrough
CT: control target
= control target key end

     0   :  { %8 = vsyncpa [#allocation3], 0  ;;  %s328_s0 = inlined_call_operand.hbm [shape: f32[8,32], index: 0, kind: input, shape index: {}]   ;;  %s329_s1 = inlined_call_operand.hbm [shape: f32[32,128], index: 1, kind: input, shape index: {}]   ;;  %s330_s2 = inlined_call_operand.vmem [shape: f32[1,128], index: 2, kind: input, shape index: {}]   ;;  %s331_s3 = inlined_call_operand.hbm [shape: f32[8,128], index: 3, kind: output, shape index: {}]  }
   0x1   :  { %9 = vsyncpa [#allocation6], 0 }
   0x2   :  { %10 = vsyncpa [#allocation4], 0  ;;  %s254_s12 = smov [#allocation2]   ;;  %s255_s14 = smov [#allocation5]  }
   0x3   :  { %s17_s13 = sshll.u32 %s254_s12, 4  ;;  %s26_s15 = sshll.u32 %s255_s14, 4  ;;  %s18_s13 = int_to_ptr.vmem [resolvable:$true] %s17_s13  ;;  %s282_s15 = int_to_ptr.vmem [resolvable:$true] %s26_s15 }
   0x4   :  { %s182_s18 = scalar_lea.hbm %s328_s0, 128 }
   0x5   :  { %p183_p0 = scmp.ne.s32.totalorder %s328_s0, %s182_s18  ;;  %p186_p1 = scmp.lt.u32.totalorder %s182_s18, %s328_s0 }
   0x7   :  { %p188_p2 = pnand %p186_p1, %p183_p0 }
   0x9   :  { %191 = shalt.err (!%p188_p2)
}
   0xa   :  { %s192_s23 = scalar_lea.vmem %s18_s13, 128  ;;  %p197_p4 = scmp.lt.s32.totalorder %s18_s13, %s18_s13 }
   0xb   :  { %p193_p3 = scmp.ne.s32.totalorder %s18_s13, %s192_s23  ;;  %p198_p5 = scmp.lt.s32.totalorder %s192_s23, %s192_s23 }
   0xd   :  { %p199_p6 = por %p198_p5, %p197_p4 }
   0xf   :  { %p200_p7 = pnand %p199_p6, %p193_p3 }
  0x11   :  { %203 = shalt.err (!%p200_p7)
}
  0x12   :  { %20 = dma.hbm_to_vmem [thread:$0]  %s328_s0, 128, %s18_s13, [#allocation3]  }
  0x13   :  { %s204_s28 = scalar_lea.hbm %s329_s1, 512 }
  0x14   :  { %p205_p8 = scmp.ne.s32.totalorder %s329_s1, %s204_s28  ;;  %p208_p9 = scmp.lt.u32.totalorder %s204_s28, %s329_s1 }
  0x16   :  { %p210_p10 = pnand %p208_p9, %p205_p8 }
  0x18   :  { %213 = shalt.err (!%p210_p10)
}
  0x19   :  { %s214_s6 = scalar_lea.vmem %s282_s15, 512  ;;  %p219_p12 = scmp.lt.s32.totalorder %s282_s15, %s282_s15 }
  0x1a   :  { %p215_p11 = scmp.ne.s32.totalorder %s282_s15, %s214_s6  ;;  %p220_p13 = scmp.lt.s32.totalorder %s214_s6, %s214_s6 }
  0x1c   :  { %p221_p0 = por %p220_p13, %p219_p12 }
  0x1e   :  { %p222_p1 = pnand %p221_p0, %p215_p11 }
  0x20   :  { %225 = shalt.err (!%p222_p1)
}
  0x21   :  { %s256_s0 = smov 128   ;;  %s257_s7 = smov 8  }
  0x22   :  { %32 = dma.hbm_to_vmem [thread:$0]  %s329_s1, 512, %s282_s15, [#allocation6], %s256_s0, %s256_s0, %s257_s7  }
  0x23   :  { %248 = dma.done.wait [#allocation3], 128  }
  0x24   :  { %249 = vsyncadd [#allocation3], 4294967168 }
  0x25   :  { %250 = dma.done.wait [#allocation6], 512  }
  0x26   :  { %251 = vsyncadd [#allocation6], 4294966784  ;;  %v258_v0 = vmov 0.0|0.0   ;;  %vm259_vm0 = vmmov 0   ;;  %v260_v1 = vmov 0.0   ;;  %v42_v2 = vld [vmem:[#allocation5] sm:$0xff] }
  0x27   :  { %166 = vmatprep.subr.bf16.mxu0 %v258_v0  ;;  %163 = vmatprep.mubr.msk.f32.mxu0 %vm259_vm0, %v260_v1  ;;  %v43_v3 = vld [vmem:[#allocation5 + $0x8] sm:$0xff]  ;;  %v44_v4 = vld [vmem:[#allocation5 + $0x10] sm:$0xff]  ;;  %v45_v6 = vld [vmem:[#allocation5 + $0x18] sm:$0xff]  ;;  %vm53_vm1 = vcmask 261120   ;;  %s261_s11 = smov [#allocation7]  }
  0x28   :  { %v167_v5 = vpack.c.bf16 %v43_v3, %v42_v2  ;;  %v170_v7 = vpack.c.bf16 %v45_v6, %v44_v4  ;;  %v41_v8 = vld [vmem:[#allocation2] sm:$0xff]  ;;  %s138_s12 = sshll.u32 %s261_s11, 4  ;;  %s139_s12 = int_to_ptr.vmem [resolvable:$true] %s138_s12 }
  0x29   :  { %v148_v9 = vld [vmem:[%s330_s2] ss:$0 sm:$0xff]  ;;  %s226_s13 = scalar_lea.vmem %s139_s12, 128  ;;  %p231_p3 = scmp.lt.s32.totalorder %s139_s12, %s139_s12 }
  0x2a   :  { %168 = vmatpush3.bf16.msra.mxu0 %v167_v5  ;;  %p227_p2 = scmp.ne.s32.totalorder %s139_s12, %s226_s13  ;;  %p232_p4 = scmp.lt.s32.totalorder %s226_s13, %s226_s13 }
  0x2b   :  { %169 = vmatprep.subr.bf16.mxu0 %v258_v0 }
  0x2c   :  { %p233_p5 = por %p232_p4, %p231_p3 }
  0x2e   :  { %171 = vmatpush3.bf16.msra.mxu0 %v170_v7  ;;  %p234_p6 = pnand %p233_p5, %p227_p2 }
  0x31   :  { %164 = vmatmul.mubr.msk.f32.vlgmr.msra.gmra.mrb[0].mxu0 %vm53_vm1, %v41_v8 }
 0x104   :  { %v123_v10 = vpop.f32.mrb[0].mxu0 }
 0x105   :  { %v124_v11 = vadd.f32 %v148_v9, %v123_v10  ;;  %v165_v12 = vpop.f32.mrb[1].mxu0 }
 0x107   :  { %v127_v13 = vmul.f32 0.5, %v124_v11 }
 0x109   :  { %180 = vtanh.f32 %v127_v13 }
 0x113   :  { %v181_v14 = vpop.eup %180 }
 0x114   :  { %v129_v15 = vadd.f32 1.0, %v181_v14 }
 0x116   :  { %v130_v16 = vmul.f32 0.5, %v129_v15 }
 0x118   :  { %131 = vst [vmem:[#allocation7] sm:$0xff] %v130_v16 }
 0x119   :  { %237 = shalt.err (!%p234_p6)
}
 0x11a   :  { %s238_s15 = scalar_lea.hbm %s331_s3, 128 }
 0x11b   :  { %p239_p7 = scmp.ne.s32.totalorder %s331_s3, %s238_s15  ;;  %p242_p8 = scmp.lt.u32.totalorder %s238_s15, %s331_s3 }
 0x11d   :  { %p244_p9 = pnand %p242_p8, %p239_p7 }
 0x11f   :  { %247 = shalt.err (!%p244_p9)
}
 0x120   :  { %141 = dma.vmem_to_hbm [thread:$0]  %s139_s12, 128, %s331_s3, [#allocation4]  }
 0x121   :  { %252 = dma.done.wait [#allocation4], 128  }
 0x122   :  { %253 = vsyncadd [#allocation4], 4294967168 }
 0x123   :  { %145 = vsyncpa [#allocation3], 1 }
 0x124   :  { %146 = vsyncpa [#allocation6], 1 }
 0x125   :  { %147 = vsyncpa [#allocation4], 1 }

// kernel: tpu_custom_call.1
= control target key start
LH: loop header
LB: loop body
LE: loop exit
PB: predicated region body
PF: predicated region fallthrough
CT: control target
= control target key end

     0   :  { %8 = vsyncpa [#allocation3], 0  ;;  %s328_s0 = inlined_call_operand.hbm [shape: f32[8,32], index: 0, kind: input, shape index: {}]   ;;  %s329_s1 = inlined_call_operand.hbm [shape: f32[32,128], index: 1, kind: input, shape index: {}]   ;;  %s330_s2 = inlined_call_operand.vmem [shape: f32[1,128], index: 2, kind: input, shape index: {}]   ;;  %s331_s3 = inlined_call_operand.hbm [shape: f32[8,128], index: 3, kind: output, shape index: {}]  }
   0x1   :  { %9 = vsyncpa [#allocation6], 0 }
   0x2   :  { %10 = vsyncpa [#allocation4], 0  ;;  %s254_s12 = smov [#allocation2]   ;;  %s255_s14 = smov [#allocation5]  }
   0x3   :  { %s17_s13 = sshll.u32 %s254_s12, 4  ;;  %s26_s15 = sshll.u32 %s255_s14, 4  ;;  %s18_s13 = int_to_ptr.vmem [resolvable:$true] %s17_s13  ;;  %s282_s15 = int_to_ptr.vmem [resolvable:$true] %s26_s15 }
   0x4   :  { %s182_s18 = scalar_lea.hbm %s328_s0, 128 }
   0x5   :  { %p183_p0 = scmp.ne.s32.totalorder %s328_s0, %s182_s18  ;;  %p186_p1 = scmp.lt.u32.totalorder %s182_s18, %s328_s0 }
   0x7   :  { %p188_p2 = pnand %p186_p1, %p183_p0 }
   0x9   :  { %191 = shalt.err (!%p188_p2)
}
   0xa   :  { %s192_s23 = scalar_lea.vmem %s18_s13, 128  ;;  %p197_p4 = scmp.lt.s32.totalorder %s18_s13, %s18_s13 }
   0xb   :  { %p193_p3 = scmp.ne.s32.totalorder %s18_s13, %s192_s23  ;;  %p198_p5 = scmp.lt.s32.totalorder %s192_s23, %s192_s23 }
   0xd   :  { %p199_p6 = por %p198_p5, %p197_p4 }
   0xf   :  { %p200_p7 = pnand %p199_p6, %p193_p3 }
  0x11   :  { %203 = shalt.err (!%p200_p7)
}
  0x12   :  { %20 = dma.hbm_to_vmem [thread:$0]  %s328_s0, 128, %s18_s13, [#allocation3]  }
  0x13   :  { %s204_s28 = scalar_lea.hbm %s329_s1, 512 }
  0x14   :  { %p205_p8 = scmp.ne.s32.totalorder %s329_s1, %s204_s28  ;;  %p208_p9 = scmp.lt.u32.totalorder %s204_s28, %s329_s1 }
  0x16   :  { %p210_p10 = pnand %p208_p9, %p205_p8 }
  0x18   :  { %213 = shalt.err (!%p210_p10)
}
  0x19   :  { %s214_s6 = scalar_lea.vmem %s282_s15, 512  ;;  %p219_p12 = scmp.lt.s32.totalorder %s282_s15, %s282_s15 }
  0x1a   :  { %p215_p11 = scmp.ne.s32.totalorder %s282_s15, %s214_s6  ;;  %p220_p13 = scmp.lt.s32.totalorder %s214_s6, %s214_s6 }
  0x1c   :  { %p221_p0 = por %p220_p13, %p219_p12 }
  0x1e   :  { %p222_p1 = pnand %p221_p0, %p215_p11 }
  0x20   :  { %225 = shalt.err (!%p222_p1)
}
  0x21   :  { %s256_s0 = smov 128   ;;  %s257_s7 = smov 8  }
  0x22   :  { %32 = dma.hbm_to_vmem [thread:$0]  %s329_s1, 512, %s282_s15, [#allocation6], %s256_s0, %s256_s0, %s257_s7  }
  0x23   :  { %248 = dma.done.wait [#allocation3], 128  }
  0x24   :  { %249 = vsyncadd [#allocation3], 4294967168 }
  0x25   :  { %250 = dma.done.wait [#allocation6], 512  }
  0x26   :  { %251 = vsyncadd [#allocation6], 4294966784  ;;  %v258_v0 = vmov 0.0|0.0   ;;  %vm259_vm0 = vmmov 0   ;;  %v260_v1 = vmov 0.0   ;;  %v42_v2 = vld [vmem:[#allocation5] sm:$0xff] }
  0x27   :  { %166 = vmatprep.subr.bf16.mxu0 %v258_v0  ;;  %163 = vmatprep.mubr.msk.f32.mxu0 %vm259_vm0, %v260_v1  ;;  %v43_v3 = vld [vmem:[#allocation5 + $0x8] sm:$0xff]  ;;  %v44_v4 = vld [vmem:[#allocation5 + $0x10] sm:$0xff]  ;;  %v45_v6 = vld [vmem:[#allocation5 + $0x18] sm:$0xff]  ;;  %vm53_vm1 = vcmask 261120   ;;  %s261_s11 = smov [#allocation7]  }
  0x28   :  { %v167_v5 = vpack.c.bf16 %v43_v3, %v42_v2  ;;  %v170_v7 = vpack.c.bf16 %v45_v6, %v44_v4  ;;  %v41_v8 = vld [vmem:[#allocation2] sm:$0xff]  ;;  %s138_s12 = sshll.u32 %s261_s11, 4  ;;  %s139_s12 = int_to_ptr.vmem [resolvable:$true] %s138_s12 }
  0x29   :  { %v148_v9 = vld [vmem:[%s330_s2] ss:$0 sm:$0xff]  ;;  %s226_s13 = scalar_lea.vmem %s139_s12, 128  ;;  %p231_p3 = scmp.lt.s32.totalorder %s139_s12, %s139_s12 }
  0x2a   :  { %168 = vmatpush3.bf16.msra.mxu0 %v167_v5  ;;  %p227_p2 = scmp.ne.s32.totalorder %s139_s12, %s226_s13  ;;  %p232_p4 = scmp.lt.s32.totalorder %s226_s13, %s226_s13 }
  0x2b   :  { %169 = vmatprep.subr.bf16.mxu0 %v258_v0 }
  0x2c   :  { %p233_p5 = por %p232_p4, %p231_p3 }
  0x2e   :  { %171 = vmatpush3.bf16.msra.mxu0 %v170_v7  ;;  %p234_p6 = pnand %p233_p5, %p227_p2 }
  0x31   :  { %164 = vmatmul.mubr.msk.f32.vlgmr.msra.gmra.mrb[0].mxu0 %vm53_vm1, %v41_v8 }
 0x104   :  { %v123_v10 = vpop.f32.mrb[0].mxu0 }
 0x105   :  { %v124_v11 = vadd.f32 %v148_v9, %v123_v10  ;;  %v165_v12 = vpop.f32.mrb[1].mxu0 }
 0x107   :  { %v127_v13 = vmul.f32 0.5, %v124_v11 }
 0x109   :  { %180 = vtanh.f32 %v127_v13 }
 0x113   :  { %v181_v14 = vpop.eup %180 }
 0x114   :  { %v129_v15 = vadd.f32 1.0, %v181_v14 }
 0x116   :  { %v130_v16 = vmul.f32 0.5, %v129_v15 }
 0x118   :  { %131 = vst [vmem:[#allocation7] sm:$0xff] %v130_v16 }
 0x119   :  { %237 = shalt.err (!%p234_p6)
}
 0x11a   :  { %s238_s15 = scalar_lea.hbm %s331_s3, 128 }
 0x11b   :  { %p239_p7 = scmp.ne.s32.totalorder %s331_s3, %s238_s15  ;;  %p242_p8 = scmp.lt.u32.totalorder %s238_s15, %s331_s3 }
 0x11d   :  { %p244_p9 = pnand %p242_p8, %p239_p7 }
 0x11f   :  { %247 = shalt.err (!%p244_p9)
}
 0x120   :  { %141 = dma.vmem_to_hbm [thread:$0]  %s139_s12, 128, %s331_s3, [#allocation4]  }
 0x121   :  { %252 = dma.done.wait [#allocation4], 128  }
 0x122   :  { %253 = vsyncadd [#allocation4], 4294967168 }
 0x123   :  { %145 = vsyncpa [#allocation3], 1 }
 0x124   :  { %146 = vsyncpa [#allocation6], 1 }
 0x125   :  { %147 = vsyncpa [#allocation4], 1 }

</bundles_post_ra>
